<compile_context>
chip_gen: v7x
topology: tpu7x:2x2x1
jax: 0.10.0
libtpu: 0.0.40
codegen_flags: <defaults>
</compile_context>

<pallas_src>
import functools

import jax
import jax.numpy as jnp
from jax.experimental import pallas as pl
from jax.experimental.pallas import tpu as pltpu


def _elu_p1(x):
    # torch.nn.functional.elu(x) + 1   (alpha = 1)
    return jnp.where(x > 0, x + 1.0, jnp.exp(jnp.minimum(x, 0.0)))


# ----------------------------------------------------------------------------
# Kernel 1: per-batch window-mean similarity   sim = qw_mean @ kw_mean^T
# (kw_mean is fed pre-transposed: plain [nw, C] @ [C, nw] MXU matmul)
# ----------------------------------------------------------------------------
def _winsim_kernel(qm_ref, kmt_ref, o_ref):
    sim = jax.lax.dot_general(qm_ref[...], kmt_ref[...],
                              (((1,), (0,)), ((), ())),
                              preferred_element_type=jnp.float32)
    o_ref[...] = sim.astype(o_ref.dtype)


def window_similarity(qm, km_t):
    # qm: [B, nw, C], km_t: [B, C, nw]  ->  [B, nw, nw]
    B, nw, c = qm.shape
    return pl.pallas_call(
        _winsim_kernel,
        out_shape=jax.ShapeDtypeStruct((B, nw, nw), jnp.float32),
        grid_spec=pltpu.PrefetchScalarGridSpec(
            num_scalar_prefetch=0,
            grid=(B,),
            in_specs=[pl.BlockSpec((None, nw, c), lambda i: (i, 0, 0)),
                      pl.BlockSpec((None, c, nw), lambda i: (i, 0, 0))],
            out_specs=pl.BlockSpec((None, nw, nw), lambda i: (i, 0, 0))),
        compiler_params=pltpu.CompilerParams(
            dimension_semantics=("parallel",)),
    )(qm, km_t)


# ----------------------------------------------------------------------------
# Kernel 2: fused top-k gather + mean-append + multi-head linear attention.
# One grid step = (batch b, block of q_block query windows).  Heads stay packed
# along lanes; per-head structure via a block-diagonal [C, C] mask.
# ----------------------------------------------------------------------------
def _topk_linattn_kernel(idx_ref, q_ref, kw_ref, vw_ref, km_ref, vm_ref,
                         o_ref, kbuf, vbuf, kvm_sc, ksm_sc, *,
                         nw, ws, topk, d_head, q_block, eps):
    b = pl.program_id(0)
    j = pl.program_id(1)
    C = q_ref.shape[-1]

    # ---- coarse (window-mean) contribution: identical for every query window of
    # this batch element.  Compute once per b (inner axis j is "arbitrary") and
    # keep it in VMEM scratch across the remaining query-window blocks. ----------
    @pl.when(j == 0)
    def _():
        kmf = _elu_p1(km_ref[...]).astype(jnp.float32)             # [nw, C]
        kvm_sc[...] = jnp.einsum('na,nb->ab', kmf,
                                 vm_ref[...].astype(jnp.float32),
                                 preferred_element_type=jnp.float32)  # [C, C]
        ksm_sc[...] = jnp.sum(kmf, axis=0, keepdims=True)          # [1, C]

    # ---- gather the top-k K/V windows for every query window in this block ----
    # (SMEM-prefetched indices drive VMEM->VMEM copies; nothing hits HBM.)
    for w in range(q_block):
        base = (b * nw + j * q_block + w) * topk
        for t in range(topk):
            src = idx_ref[base + t]
            kbuf[w, t * ws:(t + 1) * ws, :] = kw_ref[src]
            vbuf[w, t * ws:(t + 1) * ws, :] = vw_ref[src]

    kv_mean = kvm_sc[...]                                          # [C, C]
    ksum_mean = ksm_sc[...]                                        # [1, C]

    # ---- fine (gathered) contribution, batched over the query-window block -----
    qf = _elu_p1(q_ref[...])                                       # [QB, ws, C]
    kf = _elu_p1(kbuf[...])                                        # [QB, topk*ws, C]

    kv = jnp.einsum('wsa,wsb->wab', kf, vbuf[...],
                    preferred_element_type=jnp.float32)            # [QB, C, C]
    kv = kv + kv_mean[None]
    ksum = jnp.sum(kf.astype(jnp.float32), axis=1, keepdims=True) + ksum_mean[None]

    # per-head block-diagonal mask keeps heads packed along the lane axis.
    hr = jax.lax.broadcasted_iota(jnp.int32, (C, C), 0) // d_head
    hc = jax.lax.broadcasted_iota(jnp.int32, (C, C), 1) // d_head
    hmask = (hr == hc).astype(jnp.float32)                         # [C, C]

    num = jnp.einsum('wla,wab->wlb', qf, kv * hmask[None],
                     preferred_element_type=jnp.float32)           # [QB, ws, C]
    qk = (qf.astype(jnp.float32) * ksum).reshape(q_block * ws, C)
    den = jnp.dot(qk, hmask, preferred_element_type=jnp.float32)
    den = den.reshape(q_block, ws, C) + eps
    # NOTE: the reference's values/S ... *S scaling cancels algebraically.
    o_ref[...] = (num * pl.reciprocal(den, approx=True)).astype(o_ref.dtype)


# ----------------------------------------------------------------------------
# Host-side glue: window partition (layout only), means, top-k.
# ----------------------------------------------------------------------------
def _to_windows(x, win):
    # [B, C, H, W] -> [B, nw, win*win, C]   ('b d (m w1) (n w2) -> b (m n) (w1 w2) d')
    B, C, H, W = x.shape
    m, n = H // win, W // win
    xw = x.reshape(B, C, m, win, n, win)
    xw = jnp.transpose(xw, (0, 2, 4, 3, 5, 1))       # [B, m, n, w1, w2, C]
    return xw.reshape(B, m * n, win * win, C)


def topk_window_attention(q, k, v, *, d_head, win, topk, eps=1e-6, q_block=None):
    """q, k, v: [B, C, H, W] (NCHW, like PyTorch).  Returns [B, C, H, W]."""
    B, C, H, W = q.shape
    assert C % d_head == 0 and H % win == 0 and W % win == 0
    m, n = H // win, W // win
    nw, ws = m * n, win * win

    # TODO(synk): window partition / un-partition are pure layout transposes and
    # stay in XLA (fusing them would require a strided-DMA gather kernel).
    qw = _to_windows(q, win)                         # [B, nw, ws, C]
    kw = _to_windows(k, win)
    vw = _to_windows(v, win)

    qw_mean = jnp.mean(qw, axis=2)                   # [B, nw, C]
    kw_mean = jnp.mean(kw, axis=2)
    vw_mean = jnp.mean(vw, axis=2)

    sim = window_similarity(qw_mean, jnp.swapaxes(kw_mean, 1, 2))   # [B, nw, nw]
    # TODO(synk): jax.lax.top_k has no clean in-kernel Pallas equivalent; stays in XLA.
    _, topk_idx = jax.lax.top_k(sim, topk)           # [B, nw, topk]
    idx_flat = topk_idx.reshape(-1).astype(jnp.int32)

    if q_block is None:                              # largest divisor of nw <= 8
        q_block = min(nw, 8)
        while nw % q_block:
            q_block -= 1
    nblk = nw // q_block
    s_fine = topk * ws

    msg = pl.pallas_call(
        functools.partial(_topk_linattn_kernel, nw=nw, ws=ws, topk=topk,
                          d_head=d_head, q_block=q_block, eps=eps),
        out_shape=jax.ShapeDtypeStruct((B, nw, ws, C), q.dtype),
        grid_spec=pltpu.PrefetchScalarGridSpec(
            num_scalar_prefetch=1,
            grid=(B, nblk),
            in_specs=[
                pl.BlockSpec((None, q_block, ws, C), lambda b, j, idx: (b, j, 0, 0)),
                pl.BlockSpec((None, nw, ws, C), lambda b, j, idx: (b, 0, 0, 0)),
                pl.BlockSpec((None, nw, ws, C), lambda b, j, idx: (b, 0, 0, 0)),
                pl.BlockSpec((None, nw, C), lambda b, j, idx: (b, 0, 0)),
                pl.BlockSpec((None, nw, C), lambda b, j, idx: (b, 0, 0)),
            ],
            out_specs=pl.BlockSpec((None, q_block, ws, C),
                                   lambda b, j, idx: (b, j, 0, 0)),
            scratch_shapes=[pltpu.VMEM((q_block, s_fine, C), q.dtype),
                            pltpu.VMEM((q_block, s_fine, C), q.dtype),
                            pltpu.VMEM((C, C), jnp.float32),
                            pltpu.VMEM((1, C), jnp.float32)]),
        compiler_params=pltpu.CompilerParams(
            dimension_semantics=("parallel", "arbitrary")),
    )(idx_flat, qw, kw, vw, kw_mean, vw_mean)

    # window layout -> NCHW  ('b (m n) (w1 w2) c -> b c (m w1) (n w2)')
    msg = msg.reshape(B, m, n, win, win, C)
    msg = jnp.transpose(msg, (0, 5, 1, 3, 2, 4))     # [B, C, m, w1, n, w2]
    return msg.reshape(B, C, H, W)


# ----------------------------------------------------------------------------
# Pure-JAX reference (mirrors the PyTorch forward) for correctness checking.
# ----------------------------------------------------------------------------
def reference_forward(q, k, v, *, d_head, win, topk, eps=1e-6):
    B, C, H, W = q.shape
    m, n = H // win, W // win
    nw, ws, heads = m * n, win * win, C // d_head
    qw, kw, vw = (_to_windows(x, win) for x in (q, k, v))
    qm, km, vm = qw.mean(2), kw.mean(2), vw.mean(2)
    sim = jnp.einsum('bmd,bnd->bmn', qm, km)
    _, idx = jax.lax.top_k(sim, topk)
    g = jax.vmap(lambda xb, ib: xb[ib])
    fk = g(kw, idx).reshape(B, nw, topk * ws, C)
    fv = g(vw, idx).reshape(B, nw, topk * ws, C)
    keys = jnp.concatenate([fk, jnp.broadcast_to(km[:, None], (B, nw, nw, C))], 2)
    values = jnp.concatenate([fv, jnp.broadcast_to(vm[:, None], (B, nw, nw, C))], 2)
    S = topk * ws + nw
    Q = qw.reshape(B * nw, ws, heads, d_head)
    K = keys.reshape(B * nw, S, heads, d_head)
    V = values.reshape(B * nw, S, heads, d_head)
    Qf, Kf = _elu_p1(Q), _elu_p1(K)
    Vs = V / S
    KV = jnp.einsum('nshd,nshv->nhdv', Kf, Vs)
    Z = 1.0 / (jnp.einsum('nlhd,nhd->nlh', Qf, Kf.sum(1)) + eps)
    msg = jnp.einsum('nlhd,nhdv,nlh->nlhv', Qf, KV, Z) * S
    msg = msg.reshape(B, m, n, win, win, heads, d_head)
    msg = jnp.transpose(msg, (0, 5, 6, 1, 3, 2, 4))
    return msg.reshape(B, C, m * win, n * win)


if __name__ == "__main__":
    # Small shapes consistent with the module: B=2, C=16, 16x16 spatial,
    # window=4 -> 16 windows of 16 tokens (2 query-window blocks), top-k=2,
    # d_head=8 -> 2 heads.
    B, C, H, W = 2, 16, 16, 16
    d_head, win, topk = 8, 4, 2

    key = jax.random.PRNGKey(0)
    kq, kk, kv = jax.random.split(key, 3)
    q = jax.random.normal(kq, (B, C, H, W), dtype=jnp.float32)
    k = jax.random.normal(kk, (B, C, H, W), dtype=jnp.float32)
    v = jax.random.normal(kv, (B, C, H, W), dtype=jnp.float32)

    out = jax.block_until_ready(
        topk_window_attention(q, k, v, d_head=d_head, win=win, topk=topk))
    ref = reference_forward(q, k, v, d_head=d_head, win=win, topk=topk)

    assert out.shape == (B, C, H, W), out.shape
    max_err = float(jnp.max(jnp.abs(out - ref)))
    scale = max(float(jnp.max(jnp.abs(ref))), 1.0)
    if max_err <= 1e-2 * scale:   # approx reciprocal + reassociation tolerance
        print("KERNEL_OK")
    else:
        print("MISMATCH", max_err)
</pallas_src>

<mosaic_0001>
module attributes {stable_mosaic.version = 11 : i64} {
  func.func @_winsim_kernel(%arg0: i32, %arg1: memref<1x16x16xf32, #tpu.memory_space<vmem>>, %arg2: memref<1x16x16xf32, #tpu.memory_space<vmem>>, %arg3: memref<1x16x16xf32, #tpu.memory_space<vmem>>) attributes {dimension_semantics = [#tpu.dimension_semantics<parallel>], iteration_bounds = array<i64: 2>, scalar_prefetch = 0 : i64, scratch_operands = 0 : i64, tpu.core_type = #tpu.core_type<tc>, window_params = [{transform_indices = @transform_0, window_bounds = array<i64: 1, 16, 16>}, {transform_indices = @transform_1, window_bounds = array<i64: 1, 16, 16>}, {transform_indices = @transform_2, window_bounds = array<i64: 1, 16, 16>}]} {
    %c0 = arith.constant 0 : index
    %c0_0 = arith.constant 0 : index
    %c0_1 = arith.constant 0 : index
    %0 = vector.load %arg1[%c0, %c0_0, %c0_1] : memref<1x16x16xf32, #tpu.memory_space<vmem>>, vector<1x16x16xf32>
    %1 = vector.shape_cast %0 : vector<1x16x16xf32> to vector<16x16xf32>
    %c0_2 = arith.constant 0 : index
    %c0_3 = arith.constant 0 : index
    %c0_4 = arith.constant 0 : index
    %2 = vector.load %arg2[%c0_2, %c0_3, %c0_4] : memref<1x16x16xf32, #tpu.memory_space<vmem>>, vector<1x16x16xf32>
    %3 = vector.shape_cast %2 : vector<1x16x16xf32> to vector<16x16xf32>
    %cst = arith.constant dense<0.000000e+00> : vector<16x16xf32>
    %4 = tpu.matmul %1, %3, %cst {dimension_numbers = #tpu.dot_dimension_numbers<[1], [0], [0], [1], [0, 0, 1, 1], [], []>} : vector<16x16xf32>, vector<16x16xf32>, vector<16x16xf32> -> vector<16x16xf32>
    %c0_5 = arith.constant 0 : index
    %c0_6 = arith.constant 0 : index
    %c0_7 = arith.constant 0 : index
    %5 = vector.load %arg3[%c0_5, %c0_6, %c0_7] : memref<1x16x16xf32, #tpu.memory_space<vmem>>, vector<1x16x16xf32>
    %6 = vector.shape_cast %5 : vector<1x16x16xf32> to vector<16x16xf32>
    %7 = vector.shape_cast %4 : vector<16x16xf32> to vector<1x16x16xf32>
    tpu.vector_store %arg3[%c0_5, %c0_6, %c0_7], %7 {strides = array<i32>} : memref<1x16x16xf32, #tpu.memory_space<vmem>>, vector<1x16x16xf32>,
    return
  }
  func.func @transform_0(%arg0: i32) -> (i32, i32, i32) {
    %c0_i32 = arith.constant 0 : i32
    %c0_i32_0 = arith.constant 0 : i32
    %c0_i32_1 = arith.constant 0 : i32
    return %arg0, %c0_i32, %c0_i32_0 : i32, i32, i32
  }
  func.func @transform_1(%arg0: i32) -> (i32, i32, i32) {
    %c0_i32 = arith.constant 0 : i32
    %c0_i32_0 = arith.constant 0 : i32
    %c0_i32_1 = arith.constant 0 : i32
    return %arg0, %c0_i32, %c0_i32_0 : i32, i32, i32
  }
  func.func @transform_2(%arg0: i32) -> (i32, i32, i32) {
    %c0_i32 = arith.constant 0 : i32
    %c0_i32_0 = arith.constant 0 : i32
    %c0_i32_1 = arith.constant 0 : i32
    return %arg0, %c0_i32, %c0_i32_0 : i32, i32, i32
  }
}

</mosaic_0001>

<bundles_post_ra>
// kernel: tpu_custom_call.1
= control target key start
LH: loop header
LB: loop body
LE: loop exit
PB: predicated region body
PF: predicated region fallthrough
CT: control target
= control target key end

     0   :  { %7 = vsyncpa [#allocation3], 0  ;;  %s874_s0 = inlined_call_operand.hbm [shape: f32[2,16,16], index: 0, kind: input, shape index: {}]   ;;  %s875_s1 = inlined_call_operand.hbm [shape: f32[2,16,16], index: 1, kind: input, shape index: {}]   ;;  %s876_s2 = inlined_call_operand.hbm [shape: f32[2,16,16], index: 2, kind: output, shape index: {}]  }
   0x1   :  { %9 = vsyncpa [#allocation3 + $0x1], 0 }
   0x2   :  { %10 = vsyncpa [#allocation6], 0 }
   0x3   :  { %12 = vsyncpa [#allocation6 + $0x1], 0 }
   0x4   :  { %13 = vsyncpa [#allocation4], 0 }
   0x5   :  { %15 = vsyncpa [#allocation4 + $0x1], 0  ;;  %s647_s9 = smov 0   ;;  %s649_s10 = smov 0  }
   0x6   :  { %s651_s11 = smov 0   ;;  %s653_s12 = smov 0  }
   0x7 LB: > { %s668_s13 = sadd.s32 4294967295, %s623_s12   ;;  %s400_s14 = sadd.s32 4294967294, %s623_s12   ;;  %s623_s12 = sphi %s653_s12, %s892_s12   ;;  %s619_s11 = sphi %s651_s11, %s891_s11   ;;  %s615_s10 = sphi %s649_s10, %s890_s10   ;;  %s611_s9 = sphi %s647_s9, %s889_s9  }
   0x8   : > { %s672_s15 = sadd.s32 1, %s623_s12   ;;  %s28_s16 = sadd.s32 1, %s619_s11 }
   0x9   : > { %s25_s17 = ssub.s32 %s623_s12, %s672_s15  ;;  %p35_p0 = scmp.ne.s32.totalorder %s619_s11, %s615_s10 }
   0xa   : > { %p26_p1 = scmp.eq.s32.totalorder %s25_s17, 0  ;;  %p36_p2 = scmp.eq.s32.totalorder %s623_s12, 0 }
   0xb   : > { %p41_p3 = scmp.ne.s32.totalorder %s615_s10, %s611_s9  ;;  %p42_p4 = scmp.eq.s32.totalorder %s668_s13, 0 }
   0xc   : > { %s684_s18 = scalar_select %p26_p1, %s619_s11, %s28_s16  }
   0xd   : > { %p686_p5 = por %p36_p2, %p35_p0  ;;  %p690_p6 = por %p42_p4, %p41_p3 }
   0xe   : > { %p91_p7 = scmp.eq.s32.totalorder %s668_s13, 1  ;;  %p97_p8 = scmp.eq.s32.totalorder %s400_s14, 1 }
   0xf   : > { %s880_s20 = scalar_select %p690_p6, 1, 0 }
  0x10   : > { %p455_p10 = scmp.lt.s32.totalorder %s623_s12, 2  ;;  %p697_p11 = por %p91_p7, %p35_p0 }
  0x11   : > { %p701_p12 = por %p97_p8, %p41_p3  ;;  %s706_s23 = sand.u32 1, %s619_s11  }
  0x12   : > { %s881_s21 = scalar_select %p697_p11, 1, 0 }
  0x13   : > { %s882_s22 = scalar_select %p701_p12, 1, 0 }
  0x14   : > { %s420_s24 = sshll.u32 %s623_s12, 8  ;;  %s403_s25 = sshll.u32 %s706_s23, 4 }
  0x15   : > { %s715_s28 = scalar_lea.hbm %s874_s0, %s420_s24  ;;  %s121_s29 = scalar_lea.vmem [#allocation2], %s403_s25 }
  0x16   : > { %s128_s30 = sshll.u32 %s121_s29, 4  ;;  %p721_p13 = pnand %p455_p10, %p686_p5  ;;  %s725_s30 = int_to_ptr.vmem [resolvable:$true] %s128_s30 }
  0x17   : > { %s118_s4 = scalar_lea.sflag [#allocation3], %s706_s23  ;;  %s493_s5 = scalar_lea.hbm %s715_s28, 256 }
  0x18   : > { %p494_p0 = scmp.ne.s32.totalorder %s715_s28, %s493_s5  ;;  %p495_p1 = pneg %p721_p13 }
  0x19   : > { %s498_s8 = scalar_lea.hbm %s874_s0, 512  ;;  %p499_p4 = scmp.lt.u32.totalorder %s715_s28, %s874_s0 }
  0x1a   : > { %p496_p2 = pnand %p495_p1, %p494_p0  ;;  %p500_p5 = scmp.lt.u32.totalorder %s498_s8, %s493_s5 }
  0x1b   : > { %p502_p8 = scmp.lt.u32.totalorder %s493_s5, %s715_s28 }
  0x1c   : > { %p497_p3 = pneg %p496_p2  ;;  %p501_p7 = por %p500_p5, %p499_p4 }
  0x1e   : > { %p503_p10 = por %p502_p8, %p501_p7 }
  0x20   : > { %p504_p9 = pnand %p503_p10, %p497_p3 }
  0x22   : > { %507 = shalt.err (!%p504_p9)
}
  0x23   : > { %s508_s17 = scalar_lea.vmem %s725_s30, 256  ;;  %s625_s19 = smov [#allocation2]  }
  0x24   : > { %p509_p0 = scmp.ne.s32.totalorder %s725_s30, %s508_s17  ;;  %s513_s26 = sshll.u32 %s625_s19, 4  ;;  %s514_s26 = int_to_ptr.vmem [resolvable:$false] %s513_s26 }
  0x25   : > { %s515_s27 = scalar_lea.vmem %s514_s26, 512  ;;  %p516_p11 = scmp.lt.s32.totalorder %s725_s30, %s514_s26 }
  0x26   : > { %p511_p2 = pnand %p509_p0, %p495_p1  ;;  %p517_p4 = scmp.lt.s32.totalorder %s515_s27, %s508_s17 }
  0x28   : > { %p512_p12 = pneg %p511_p2  ;;  %p518_p5 = por %p517_p4, %p516_p11 }
  0x2a   : > { %p519_p7 = pnand %p518_p5, %p512_p12 }
  0x2c   : > { %522 = shalt.err (!%p519_p7)
}
  0x2d   : > { %s626_s29 = smov 128   ;;  %s627_s5 = smov 8  }
  0x2e   : > { %447 = dma.hbm_to_vmem [thread:$0]  (!%p721_p13), %s715_s28, 256, %s725_s30, %s118_s4, %s626_s29, %s626_s29, %s627_s5  }
  0x2f   : > { %p409_p9 = scmp.ge.s32.totalorder %s623_s12, 1  ;;  %p157_p11 = scmp.lt.s32.totalorder %s623_s12, 3 }
  0x30   : > { %s769_s14 = scalar_lea.hbm %s875_s1, %s420_s24  ;;  %s142_s16 = scalar_lea.vmem [#allocation5], %s403_s25 }
  0x31   : > { %p760_p12 = pnand %p409_p9, %p157_p11  ;;  %s149_s17 = sshll.u32 %s142_s16, 4  ;;  %s773_s17 = int_to_ptr.vmem [resolvable:$true] %s149_s17 }
  0x32   : > { %s139_s28 = scalar_lea.sflag [#allocation6], %s706_s23  ;;  %s523_s30 = scalar_lea.hbm %s769_s14, 256 }
  0x33   : > { %p524_p3 = scmp.ne.s32.totalorder %s769_s14, %s523_s30  ;;  %s528_s24 = scalar_lea.hbm %s875_s1, 512 }
  0x34   : > { %p529_p0 = scmp.lt.u32.totalorder %s769_s14, %s875_s1  ;;  %p530_p2 = scmp.lt.u32.totalorder %s528_s24, %s523_s30 }
  0x35   : > { %p526_p8 = pnand %p524_p3, %p495_p1  ;;  %p532_p5 = scmp.lt.u32.totalorder %s523_s30, %s769_s14 }
  0x36   : > { %p531_p4 = por %p530_p2, %p529_p0 }
  0x37   : > { %p527_p10 = pneg %p526_p8 }
  0x38   : > { %p533_p7 = por %p532_p5, %p531_p4 }
  0x3a   : > { %p534_p9 = pnand %p533_p7, %p527_p10 }
  0x3c   : > { %537 = shalt.err (!%p534_p9)
}
  0x3d   : > { %s538_s25 = scalar_lea.vmem %s773_s17, 256  ;;  %s628_s7 = smov [#allocation5]  }
  0x3e   : > { %p539_p11 = scmp.ne.s32.totalorder %s773_s17, %s538_s25  ;;  %s543_s8 = sshll.u32 %s628_s7, 4  ;;  %s544_s8 = int_to_ptr.vmem [resolvable:$false] %s543_s8 }
  0x3f   : > { %s545_s16 = scalar_lea.vmem %s544_s8, 512  ;;  %p546_p6 = scmp.lt.s32.totalorder %s773_s17, %s544_s8 }
  0x40   : > { %p541_p3 = pnand %p539_p11, %p495_p1  ;;  %p547_p0 = scmp.lt.s32.totalorder %s545_s16, %s538_s25 }
  0x42   : > { %p542_p8 = pneg %p541_p3  ;;  %p548_p2 = por %p547_p0, %p546_p6 }
  0x44   : > { %p549_p4 = pnand %p548_p2, %p542_p8 }
  0x46   : > { %552 = shalt.err (!%p549_p4)
}
  0x47   : > { %450 = dma.hbm_to_vmem [thread:$0]  (!%p721_p13), %s769_s14, 256, %s773_s17, %s139_s28, %s626_s29, %s626_s29, %s627_s5  }
  0x48   : > { %161 = sbr.rel (%p760_p12) target bundleno = 317 (0x13d), region = 28  ;;  %s807_s30 = sand.u32 (!%p760_p12), 1, %s615_s10  }
  0x49   : > { %s410_s4 = sshll.u32 (!%p760_p12), %s807_s30, 4  ;;  %s164_s19 = scalar_lea.sflag (!%p760_p12), [#allocation3], %s807_s30 }
  0x4a   : > { %s167_s3 = scalar_lea.vmem (!%p760_p12), [#allocation2], %s410_s4  ;;  %p885_p6 = scmp.ne.s32.totalorder (!%p760_p12), %s880_s20, 0 }
  0x4f   : > { %598 = dma.done.wait (%p885_p6), %s164_s19, 256  }
  0x50   : > { %600 = vsyncadd (%p885_p6), %s164_s19, 4294967040  ;;  %s173_s23 = scalar_lea.sflag [#allocation6], %s807_s30  ;;  %s176_s29 = scalar_lea.vmem [#allocation5], %s410_s4 }
  0x51   : > { %602 = dma.done.wait (%p885_p6), %s173_s23, 256  }
  0x52   : > { %604 = vsyncadd (%p885_p6), %s173_s23, 4294967040  ;;  %vm206_vm0 = vcmask 130048   ;;  %v204_v0 = vld [vmem:[%s176_s29] sm:$0xff]  ;;  %v205_v1 = vld [vmem:[%s176_s29 + $0x8] sm:$0xff]  ;;  %s201_s5 = scalar_lea.vmem [#allocation7], %s410_s4  ;;  %s422_s14 = sshll.u32 %s668_s13, 8 }
  0x53   : > { %v202_v2 = vld [vmem:[%s167_s3] sm:$0xff]  ;;  %v434_v3 = vpack.c.bf16 %v205_v1, %v204_v0  ;;  %v203_v4 = vld [vmem:[%s167_s3 + $0x8] sm:$0xff]  ;;  %s304_s6 = sshll.u32 %s201_s5, 4  ;;  %s828_s28 = scalar_lea.hbm %s876_s2, %s422_s14  ;;  %s823_s6 = int_to_ptr.vmem [resolvable:$true] %s304_s6 }
  0x54   : > { %431 = vmatprep.mubr.msk.f32.mxu0 %vm206_vm0, %v202_v2  ;;  %s291_s24 = scalar_lea.sflag [#allocation4], %s807_s30  ;;  %s553_s26 = scalar_lea.vmem %s823_s6, 256 }
  0x55   : > { %435 = vmatprep.subr.bf16.mxu0 %v434_v3  ;;  %p554_p13 = scmp.ne.s32.totalorder %s823_s6, %s553_s26  ;;  %p886_p1 = scmp.ne.s32.totalorder %s881_s21, 0 }
  0x56   : > { %437 = vmatpush3.bf16.msra.mxu0 %v434_v3  ;;  %s629_s13 = smov [#allocation7]  }
  0x57   : > { %p555_p12 = pnand %p554_p13, %p886_p1  ;;  %s557_s27 = sshll.u32 %s629_s13, 4  ;;  %s558_s27 = int_to_ptr.vmem [resolvable:$false] %s557_s27 }
  0x58   : > { %s559_s25 = scalar_lea.vmem %s558_s27, 512  ;;  %p560_p5 = scmp.lt.s32.totalorder %s823_s6, %s558_s27 }
  0x59   : > { %432 = vmatmul.mubr.msk.f32.vlgmr.msra.gmra.mrb[0].mxu0 %vm206_vm0, %v203_v4  ;;  %p556_p10 = pneg %p555_p12  ;;  %p561_p7 = scmp.lt.s32.totalorder %s559_s25, %s553_s26 }
  0x5b   : > { %p562_p9 = por %p561_p7, %p560_p5 }
  0x5d   : > { %p563_p11 = pnand %p562_p9, %p556_p10 }
 0x12c   : > { %v433_v5 = vpop.f32.mrb[0].mxu0 }
 0x12d   : > { %289 = vst.msk [vmem:[%s201_s5 + $0x8] sm:$0xff] %vm206_vm0, %v433_v5  ;;  %v279_v6 = vpop.f32.mrb[1].mxu0 }
 0x12e   : > { %288 = vst.msk [vmem:[%s201_s5] sm:$0xff] %vm206_vm0, %v279_v6 }
 0x12f   : > { %566 = shalt.err (!%p563_p11)
}
 0x130   : > { %s567_s7 = scalar_lea.hbm %s828_s28, 256  ;;  %s571_s4 = scalar_lea.hbm %s876_s2, 512 }
 0x131   : > { %p568_p3 = scmp.ne.s32.totalorder %s828_s28, %s567_s7  ;;  %p572_p2 = scmp.lt.u32.totalorder %s828_s28, %s876_s2 }
 0x132   : > { %p573_p4 = scmp.lt.u32.totalorder %s571_s4, %s567_s7  ;;  %p575_p13 = scmp.lt.u32.totalorder %s567_s7, %s828_s28 }
 0x133   : > { %p569_p8 = pnand %p568_p3, %p886_p1 }
 0x134   : > { %p574_p6 = por %p573_p4, %p572_p2 }
 0x135   : > { %p570_p0 = pneg %p569_p8 }
 0x136   : > { %p576_p12 = por %p575_p13, %p574_p6 }
 0x138   : > { %p577_p10 = pnand %p576_p12, %p570_p0 }
 0x13a   : > { %580 = shalt.err (!%p577_p10)
}
 0x13b   : > { %s630_s23 = smov 128   ;;  %s631_s29 = smov 8  }
 0x13c   : > { %442 = dma.vmem_to_hbm [thread:$0]  (%p886_p1), %s823_s6, 256, %s828_s28, %s291_s24, %s630_s23, %s630_s23, %s631_s29  }
 0x13d PF: > { %s319_s5 = sand.u32 1, %s611_s9   ;;  %p887_p5 = scmp.ne.s32.totalorder %s882_s22, 0 }
 0x13e   : > { %p888_p7 = scmp.ge.s32.totalorder %s623_s12, 2  ;;  %s320_s14 = scalar_lea.sflag [#allocation4], %s319_s5 }
 0x140   : > { %p452_p9 = pnand %p888_p7, %p887_p5 }
 0x142   : > { %606 = dma.done.wait (!%p452_p9), %s320_s14, 256  }
 0x143   : > { %608 = vsyncadd (!%p452_p9), %s320_s14, 4294967040  ;;  %p18_p11 = scmp.ge.s32.totalorder %s672_s15, 4   ;;  %s889_s9 = smov %s615_s10 }
 0x144   : > { %s890_s10 = smov %s619_s11  ;;  %s891_s11 = smov %s684_s18 }
 0x145   : > { %s892_s12 = smov %s672_s15  ;;  %20 = sbr.rel (!%p18_p11) target bundleno = 7 (0x7), region = 86 }
 0x14c   :  { %325 = vsyncpa [#allocation3], 1 }
 0x14d   :  { %327 = vsyncpa [#allocation3 + $0x1], 1 }
 0x14e   :  { %328 = vsyncpa [#allocation6], 1 }
 0x14f   :  { %330 = vsyncpa [#allocation6 + $0x1], 1 }
 0x150   :  { %331 = vsyncpa [#allocation4], 1 }
 0x151   :  { %333 = vsyncpa [#allocation4 + $0x1], 1 }

</bundles_post_ra>
